<compile_context>
chip_gen: v7x
topology: tpu7x:2x2x1
jax: 0.10.0
libtpu: 0.0.40
codegen_flags: <defaults>
</compile_context>

<pallas_src>
import jax
import jax.numpy as jnp
from jax.experimental import pallas as pl
from jax.experimental.pallas import tpu as pltpu

HIDDEN_FC = 256     # nn.Linear(2H, 256)
NUM_CLASSES = 2     # nn.Linear(256, 2)


def baseline_mlp_kernel(a_ref, b_ref, w1a_ref, w1b_ref, b1_ref, w2_ref, b2_ref,
                        out_ref):
    # Layer 1: concat(a, b) @ W1 == a @ W1[:H] + b @ W1[H:]   (no concat copy).
    # bf16 MXU operands, f32 accumulation.
    a = a_ref[...].astype(jnp.bfloat16)
    b = b_ref[...].astype(jnp.bfloat16)
    h = (jnp.dot(a, w1a_ref[...], preferred_element_type=jnp.float32)
         + jnp.dot(b, w1b_ref[...], preferred_element_type=jnp.float32)
         + b1_ref[...])
    h = jnp.maximum(h, 0.0)                                   # ReLU (f32 epilogue)

    # Layer 2 (N=2 classes): bf16 operands, f32 accumulate.
    logits = (jnp.dot(h.astype(jnp.bfloat16), w2_ref[...],
                      preferred_element_type=jnp.float32) + b2_ref[...])

    # 2-class log_softmax via the logit difference (no XLU cross-lane reductions):
    #   d = l1 - l0 ; out0 = -softplus(d) ; out1 = d - softplus(d)
    d = logits[:, 1:2] - logits[:, 0:1]
    sp = jnp.maximum(d, 0.0) + jnp.log(1.0 + jnp.exp(-jnp.abs(d)))  # softplus(d)
    out_ref[...] = jnp.concatenate([-sp, d - sp], axis=1).astype(out_ref.dtype)


def baseline_mlp(emb_motif, emb_motif_mod, params, *, block_b=2048):
    """params: dict from prepare_params():
       w1a [H,256] bf16, w1b [H,256] bf16, b1 [1,256] f32, w2 [256,2] bf16, b2 [1,2] f32."""
    assert emb_motif.shape == emb_motif_mod.shape
    B, H = emb_motif.shape
    w1a, w1b, b1, w2, b2 = (params["w1a"], params["w1b"], params["b1"],
                            params["w2"], params["b2"])

    if B <= block_b:
        # One tile: no grid, whole-array VMEM blocks (launch-overhead bound).
        return pl.pallas_call(
            baseline_mlp_kernel,
            out_shape=jax.ShapeDtypeStruct((B, NUM_CLASSES), jnp.float32),
            in_specs=[pl.BlockSpec(memory_space=pltpu.MemorySpace.VMEM)] * 7,
            out_specs=pl.BlockSpec(memory_space=pltpu.MemorySpace.VMEM),
        )(emb_motif, emb_motif_mod, w1a, w1b, b1, w2, b2)

    # Large-batch path: tile the batch (no pad -- Pallas clips the boundary
    # block), keep weights VMEM-resident, deep-buffer the activation streams.
    nb = pl.cdiv(B, block_b)
    return pl.pallas_call(
        baseline_mlp_kernel,
        out_shape=jax.ShapeDtypeStruct((B, NUM_CLASSES), jnp.float32),
        grid=(nb,),
        in_specs=[
            pl.BlockSpec((block_b, H), lambda i: (i, 0),
                         pipeline_mode=pl.Buffered(3)),               # emb_motif
            pl.BlockSpec((block_b, H), lambda i: (i, 0),
                         pipeline_mode=pl.Buffered(3)),               # emb_motif_mod
            pl.BlockSpec((H, HIDDEN_FC), lambda i: (0, 0)),            # W1[:H] (resident)
            pl.BlockSpec((H, HIDDEN_FC), lambda i: (0, 0)),            # W1[H:] (resident)
            pl.BlockSpec((1, HIDDEN_FC), lambda i: (0, 0)),            # b1     (resident)
            pl.BlockSpec((HIDDEN_FC, NUM_CLASSES), lambda i: (0, 0)),  # W2     (resident)
            pl.BlockSpec((1, NUM_CLASSES), lambda i: (0, 0)),          # b2     (resident)
        ],
        out_specs=pl.BlockSpec((block_b, NUM_CLASSES), lambda i: (i, 0)),
        compiler_params=pltpu.CompilerParams(
            dimension_semantics=("parallel",),   # shard grid steps across v7x TCs
            vmem_limit_bytes=48 * 1024 * 1024),  # allow block_b sweeps up to ~4096
    )(emb_motif, emb_motif_mod, w1a, w1b, b1, w2, b2)


def init_params(key, hidden_dim):
    """Deterministic synthetic init matching nn.Linear(2H,256) / nn.Linear(256,2),
    stored as [in_features, out_features] (transpose of PyTorch layout), f32."""
    k1, k2, k3, k4 = jax.random.split(key, 4)
    in1 = 2 * hidden_dim
    lim1 = 1.0 / jnp.sqrt(in1)
    lim2 = 1.0 / jnp.sqrt(float(HIDDEN_FC))
    w1 = jax.random.uniform(k1, (in1, HIDDEN_FC), jnp.float32, -lim1, lim1)
    b1 = jax.random.uniform(k2, (1, HIDDEN_FC), jnp.float32, -lim1, lim1)
    w2 = jax.random.uniform(k3, (HIDDEN_FC, NUM_CLASSES), jnp.float32, -lim2, lim2)
    b2 = jax.random.uniform(k4, (1, NUM_CLASSES), jnp.float32, -lim2, lim2)
    return {"w1": w1, "b1": b1, "w2": w2, "b2": b2}


def prepare_params(raw, hidden_dim):
    """One-time prep: split W1 at the concat boundary and cast MXU operands to bf16."""
    H = hidden_dim
    return {
        "w1a": raw["w1"][:H].astype(jnp.bfloat16),
        "w1b": raw["w1"][H:].astype(jnp.bfloat16),
        "b1": raw["b1"].astype(jnp.float32),
        "w2": raw["w2"].astype(jnp.bfloat16),
        "b2": raw["b2"].astype(jnp.float32),
    }


def reference_matched(emb_motif, emb_motif_mod, params):
    """Pure-JAX reference using the same bf16-operand / f32-accumulate pattern."""
    a = emb_motif.astype(jnp.bfloat16)
    b = emb_motif_mod.astype(jnp.bfloat16)
    h = (jnp.dot(a, params["w1a"], preferred_element_type=jnp.float32)
         + jnp.dot(b, params["w1b"], preferred_element_type=jnp.float32)
         + params["b1"])
    h = jnp.maximum(h, 0.0)
    logits = jnp.dot(h.astype(jnp.bfloat16), params["w2"],
                     preferred_element_type=jnp.float32) + params["b2"]
    return jax.nn.log_softmax(logits, axis=1)


def reference_f32(emb_motif, emb_motif_mod, raw):
    """Full-f32 semantics check (matches the PyTorch module formula)."""
    x = jnp.concatenate([emb_motif.astype(jnp.float32),
                         emb_motif_mod.astype(jnp.float32)], axis=1)
    h = jnp.maximum(x @ raw["w1"] + raw["b1"], 0.0)
    logits = h @ raw["w2"] + raw["b2"]
    return jax.nn.log_softmax(logits, axis=1)


if __name__ == "__main__":
    # TODO(synk): SkipLastGNN emb_model is built in BaselineMLP.__init__ but never
    # used in forward(), so only the MLP + log_softmax path is implemented.
    B, H = 8, 32  # batch=8, hidden_dim=32
    key = jax.random.PRNGKey(0)
    kx, ky, kp, kx2, ky2 = jax.random.split(key, 5)
    emb_motif = jax.random.normal(kx, (B, H), jnp.float32).astype(jnp.bfloat16)
    emb_motif_mod = jax.random.normal(ky, (B, H), jnp.float32).astype(jnp.bfloat16)
    raw = init_params(kp, H)
    params = prepare_params(raw, H)

    # Small-batch (no-grid) path.
    out = jax.block_until_ready(baseline_mlp(emb_motif, emb_motif_mod, params))
    assert out.shape == (B, NUM_CLASSES)
    ref = reference_matched(emb_motif, emb_motif_mod, params)
    assert jnp.allclose(out, ref, atol=2e-3, rtol=2e-3), (out, ref)
    ref32 = reference_f32(emb_motif, emb_motif_mod, raw)
    assert jnp.allclose(out, ref32, atol=1e-1, rtol=1e-1)  # bf16-operand precision

    # Batch-tiled (grid) path: B2 is NOT a multiple of block_b, exercising the
    # pad-free partial boundary block; nb = 4 balanced steps keep both v7x TCs busy.
    B2, block_b = 8000, 2048
    a2 = jax.random.normal(kx2, (B2, H), jnp.float32).astype(jnp.bfloat16)
    b2_in = jax.random.normal(ky2, (B2, H), jnp.float32).astype(jnp.bfloat16)
    out2 = jax.block_until_ready(baseline_mlp(a2, b2_in, params, block_b=block_b))
    assert out2.shape == (B2, NUM_CLASSES)
    ref2 = reference_matched(a2, b2_in, params)
    assert jnp.allclose(out2, ref2, atol=2e-3, rtol=2e-3)

    print("KERNEL_OK")
</pallas_src>

<mosaic_0001>
module attributes {stable_mosaic.version = 11 : i64} {
  func.func @baseline_mlp_kernel(%arg0: memref<8x32xbf16, #tpu.memory_space<vmem>>, %arg1: memref<8x32xbf16, #tpu.memory_space<vmem>>, %arg2: memref<32x256xbf16, #tpu.memory_space<vmem>>, %arg3: memref<32x256xbf16, #tpu.memory_space<vmem>>, %arg4: memref<1x256xf32, #tpu.memory_space<vmem>>, %arg5: memref<256x2xbf16, #tpu.memory_space<vmem>>, %arg6: memref<1x2xf32, #tpu.memory_space<vmem>>, %arg7: memref<8x2xf32, #tpu.memory_space<vmem>>) attributes {dimension_semantics = [], scalar_prefetch = 0 : i64, scratch_operands = 0 : i64, tpu.core_type = #tpu.core_type<tc>} {
    %c0 = arith.constant 0 : index
    %c0_0 = arith.constant 0 : index
    %0 = vector.load %arg0[%c0, %c0_0] : memref<8x32xbf16, #tpu.memory_space<vmem>>, vector<8x32xbf16>
    %c0_1 = arith.constant 0 : index
    %c0_2 = arith.constant 0 : index
    %1 = vector.load %arg1[%c0_1, %c0_2] : memref<8x32xbf16, #tpu.memory_space<vmem>>, vector<8x32xbf16>
    %c0_3 = arith.constant 0 : index
    %c0_4 = arith.constant 0 : index
    %2 = vector.load %arg2[%c0_3, %c0_4] : memref<32x256xbf16, #tpu.memory_space<vmem>>, vector<32x256xbf16>
    %cst = arith.constant dense<0.000000e+00> : vector<8x256xf32>
    %3 = tpu.matmul %0, %2, %cst {dimension_numbers = #tpu.dot_dimension_numbers<[1], [0], [0], [1], [0, 0, 1, 1], [], []>} : vector<8x32xbf16>, vector<32x256xbf16>, vector<8x256xf32> -> vector<8x256xf32>
    %c0_5 = arith.constant 0 : index
    %c0_6 = arith.constant 0 : index
    %4 = vector.load %arg3[%c0_5, %c0_6] : memref<32x256xbf16, #tpu.memory_space<vmem>>, vector<32x256xbf16>
    %cst_7 = arith.constant dense<0.000000e+00> : vector<8x256xf32>
    %5 = tpu.matmul %1, %4, %cst_7 {dimension_numbers = #tpu.dot_dimension_numbers<[1], [0], [0], [1], [0, 0, 1, 1], [], []>} : vector<8x32xbf16>, vector<32x256xbf16>, vector<8x256xf32> -> vector<8x256xf32>
    %6 = arith.addf %3, %5 : vector<8x256xf32>
    %c0_8 = arith.constant 0 : index
    %c0_9 = arith.constant 0 : index
    %7 = vector.load %arg4[%c0_8, %c0_9] : memref<1x256xf32, #tpu.memory_space<vmem>>, vector<1x256xf32>
    %8 = vector.broadcast %7 : vector<1x256xf32> to vector<8x256xf32>
    %9 = arith.addf %6, %8 : vector<8x256xf32>
    %cst_10 = arith.constant 0.000000e+00 : f32
    %10 = vector.broadcast %cst_10 : f32 to vector<8x256xf32>
    %11 = arith.maximumf %9, %10 : vector<8x256xf32>
    %12 = arith.truncf %11 : vector<8x256xf32> to vector<8x256xbf16>
    %c0_11 = arith.constant 0 : index
    %c0_12 = arith.constant 0 : index
    %13 = vector.load %arg5[%c0_11, %c0_12] : memref<256x2xbf16, #tpu.memory_space<vmem>>, vector<256x2xbf16>
    %cst_13 = arith.constant dense<0.000000e+00> : vector<8x2xf32>
    %14 = tpu.matmul %12, %13, %cst_13 {dimension_numbers = #tpu.dot_dimension_numbers<[1], [0], [0], [1], [0, 0, 1, 1], [], []>} : vector<8x256xbf16>, vector<256x2xbf16>, vector<8x2xf32> -> vector<8x2xf32>
    %c0_14 = arith.constant 0 : index
    %c0_15 = arith.constant 0 : index
    %15 = vector.load %arg6[%c0_14, %c0_15] : memref<1x2xf32, #tpu.memory_space<vmem>>, vector<1x2xf32>
    %16 = vector.broadcast %15 : vector<1x2xf32> to vector<8x2xf32>
    %17 = arith.addf %14, %16 : vector<8x2xf32>
    %18 = vector.extract_strided_slice %17 {offsets = [0, 1], sizes = [8, 1], strides = [1, 1]} : vector<8x2xf32> to vector<8x1xf32>
    %19 = vector.extract_strided_slice %17 {offsets = [0, 0], sizes = [8, 1], strides = [1, 1]} : vector<8x2xf32> to vector<8x1xf32>
    %20 = arith.subf %18, %19 : vector<8x1xf32>
    %cst_16 = arith.constant 0.000000e+00 : f32
    %21 = vector.broadcast %cst_16 : f32 to vector<8x1xf32>
    %22 = arith.maximumf %20, %21 : vector<8x1xf32>
    %23 = math.absf %20 : vector<8x1xf32>
    %cst_17 = arith.constant 0.000000e+00 : f32
    %24 = vector.broadcast %cst_17 : f32 to vector<8x1xf32>
    %25 = arith.subf %24, %23 : vector<8x1xf32>
    %26 = math.exp %25 : vector<8x1xf32>
    %cst_18 = arith.constant 1.000000e+00 : f32
    %27 = vector.broadcast %cst_18 : f32 to vector<8x1xf32>
    %28 = arith.addf %27, %26 : vector<8x1xf32>
    %29 = math.log %28 : vector<8x1xf32>
    %30 = arith.addf %22, %29 : vector<8x1xf32>
    %cst_19 = arith.constant 0.000000e+00 : f32
    %31 = vector.broadcast %cst_19 : f32 to vector<8x1xf32>
    %32 = arith.subf %31, %30 : vector<8x1xf32>
    %33 = arith.subf %20, %30 : vector<8x1xf32>
    %34 = tpu.concatenate %32, %33 in 1 : vector<8x1xf32>, vector<8x1xf32> -> vector<8x2xf32>
    %c0_20 = arith.constant 0 : index
    %c0_21 = arith.constant 0 : index
    %35 = vector.load %arg7[%c0_20, %c0_21] : memref<8x2xf32, #tpu.memory_space<vmem>>, vector<8x2xf32>
    tpu.vector_store %arg7[%c0_20, %c0_21], %34 {strides = array<i32>} : memref<8x2xf32, #tpu.memory_space<vmem>>, vector<8x2xf32>,
    return
  }
}

</mosaic_0001>

<bundles_post_ra>
// kernel: tpu_custom_call.1
= control target key start
LH: loop header
LB: loop body
LE: loop exit
PB: predicated region body
PF: predicated region fallthrough
CT: control target
= control target key end

     0   :  { %v471_v1 = vmov 0   ;;  %vm57_vm0 = vcmask 261120   ;;  %v168_v27 = vlaneseq  ;;  %s472_s26 = smov 1   ;;  %vm379_vm1 = vcmask 7168   ;;  %s603_s3 = inlined_call_operand.vmem [shape: bf16[32,256], index: 3, kind: input, shape index: {}]   ;;  %s604_s2 = inlined_call_operand.vmem [shape: bf16[32,256], index: 2, kind: input, shape index: {}]   ;;  %s605_s1 = inlined_call_operand.vmem [shape: bf16[8,32], index: 1, kind: input, shape index: {}]   ;;  %s606_s5 = inlined_call_operand.vmem [shape: bf16[256,2], index: 5, kind: input, shape index: {}]   ;;  %s607_s0 = inlined_call_operand.vmem [shape: bf16[8,32], index: 0, kind: input, shape index: {}]   ;;  %s608_s4 = inlined_call_operand.vmem [shape: f32[1,256], index: 4, kind: input, shape index: {}]   ;;  %s609_s6 = inlined_call_operand.vmem [shape: f32[1,2], index: 6, kind: input, shape index: {}]   ;;  %s610_s7 = inlined_call_operand.vmem [shape: f32[8,2], index: 7, kind: output, shape index: {}]  }
   0x1   :  { %v439_v0 = vld [vmem:[%s603_s3 + $0x4] ss:$8 sps:$4 sm:$0xff]   ;;  %93 = vmatprep.mubr.bf16.mxu1 %v471_v1  ;;  %v441_v2 = vld [vmem:[%s603_s3] ss:$8 sps:$4 sm:$0xff]   ;;  %v442_v3 = vld [vmem:[%s603_s3 + $0x14] ss:$8 sps:$4 sm:$0xff]  }
   0x2   :  { %61 = vmatprep.subr.bf16.mxu1 %v439_v0  ;;  %v444_v4 = vld [vmem:[%s603_s3 + $0x10] ss:$8 sps:$4 sm:$0xff]   ;;  %v447_v5 = vld [vmem:[%s604_s2 + $0x4] ss:$8 sps:$4 sm:$0xff]   ;;  %v28_v6 = vld [vmem:[%s605_s1] sm:$0xf] }
   0x3   :  { %62 = vmatpush1.bf16.msra.mxu1 %v441_v2  ;;  %v445_v7 = vld [vmem:[%s604_s2] ss:$8 sps:$4 sm:$0xff]   ;;  %v450_v8 = vld [vmem:[%s604_s2 + $0x14] ss:$8 sps:$4 sm:$0xff]   ;;  %v448_v12 = vld [vmem:[%s604_s2 + $0x10] ss:$8 sps:$4 sm:$0xff]  }
   0x4   :  { %63 = vmatprep.subr.bf16.mxu1 %v442_v3  ;;  %v451_v9 = vld [vmem:[%s606_s5 + $0x40] sm:$0xff]   ;;  %v453_v11 = vld [vmem:[%s606_s5 + $0x48] sm:$0xff]   ;;  %v455_v14 = vld [vmem:[%s606_s5 + $0x50] sm:$0xff]   ;;  %v169_v28 = vshrl.u32 %v168_v27, 7  ;;  %vm381_vm2 = vcmask 15360  }
   0x5   :  { %v452_v10 = vld [vmem:[%s606_s5] sm:$0xff]   ;;  %414 = vmatprep.subr.bf16.mxu0 %v451_v9  ;;  %v454_v13 = vld [vmem:[%s606_s5 + $0x8] sm:$0xff]   ;;  %v456_v15 = vld [vmem:[%s606_s5 + $0x10] sm:$0xff]  }
   0x6   :  { %415 = vmatpush3.bf16.msra.mxu0 %v452_v10  ;;  %v457_v16 = vld [vmem:[%s606_s5 + $0x58] sm:$0xff]   ;;  %v27_v17 = vld [vmem:[%s607_s0] sm:$0xf]  ;;  %v461_v21 = vld [vmem:[%s606_s5 + $0x68] sm:$0xff]   ;;  %v170_v33 = vsub.s32 0, %v169_v28  ;;  %v174_v35 = vsub.s32 1, %v169_v28 }
   0x7   :  { %64 = vmatpush1.bf16.msra.mxu1 %v444_v4  ;;  %416 = vmatprep.subr.bf16.mxu0 %v453_v11  ;;  %v458_v18 = vld [vmem:[%s606_s5 + $0x18] sm:$0xff]   ;;  %v459_v19 = vld [vmem:[%s606_s5 + $0x60] sm:$0xff]   ;;  %v462_v22 = vld [vmem:[%s606_s5 + $0x28] sm:$0xff]  }
   0x8   :  { %125 = vmatprep.subr.bf16.mxu1 %v447_v5  ;;  %v460_v20 = vld [vmem:[%s606_s5 + $0x20] sm:$0xff]   ;;  %v463_v23 = vld [vmem:[%s606_s5 + $0x70] sm:$0xff]   ;;  %v465_v25 = vld [vmem:[%s606_s5 + $0x78] sm:$0xff]  }
   0x9   :  { %v464_v24 = vld [vmem:[%s606_s5 + $0x30] sm:$0xff]   ;;  %v466_v26 = vld [vmem:[%s606_s5 + $0x38] sm:$0xff]   ;;  %v166_v34 = vld [vmem:[%s608_s4] sm:$0x3] }
   0xa   :  { %391 = vmatmul.mubr.msk.bf16.vlgmr.msra.gmra.mrb[0].mxu1 %vm57_vm0, %v28_v6  ;;  %417 = vmatpush3.bf16.msra.mxu0 %v454_v13  ;;  %v171_v36 = vrot.slane %v166_v34, %v170_v33  ;;  %v175_v38 = vrot.slane %v166_v34, %v174_v35  ;;  %v397_v52 = vld [vmem:[%s609_s6] ss:$0 sm:$0xff]  ;;  %s473_s6 = smov 127  }
   0xb   :  { %126 = vmatpush1.bf16.msra.mxu1 %v445_v7  ;;  %157 = vmatprep.mubr.bf16.mxu1 %v471_v1 }
   0xc   :  { %127 = vmatprep.subr.bf16.mxu1 %v450_v8  ;;  %418 = vmatprep.subr.bf16.mxu0 %v455_v14 }
   0xe   :  { %419 = vmatpush3.bf16.msra.mxu0 %v456_v15 }
   0xf   :  { %128 = vmatpush1.bf16.msra.mxu1 %v448_v12  ;;  %420 = vmatprep.subr.bf16.mxu0 %v457_v16 }
  0x12   :  { %396 = vmatmul.mubr.msk.bf16.vlgmr.msra.gmra.mrb[4].mxu1 %vm57_vm0, %v27_v17  ;;  %421 = vmatpush3.bf16.msra.mxu0 %v458_v18 }
  0x13   :  { %422 = vmatprep.subr.bf16.mxu0 %v459_v19 }
  0x16   :  { %423 = vmatpush3.bf16.msra.mxu0 %v460_v20 }
  0x17   :  { %424 = vmatprep.subr.bf16.mxu0 %v461_v21 }
  0x1a   :  { %425 = vmatpush3.bf16.msra.mxu0 %v462_v22 }
  0x1b   :  { %426 = vmatprep.subr.bf16.mxu0 %v463_v23 }
  0x1e   :  { %427 = vmatpush3.bf16.msra.mxu0 %v464_v24 }
  0x1f   :  { %428 = vmatprep.subr.bf16.mxu0 %v465_v25 }
  0x22   :  { %429 = vmatpush3.bf16.msra.mxu0 %v466_v26 }
  0xdd   :  { %v95_v29 = vpop.f32.mrb[0].mxu1 }
  0xde   :  { %v97_v30 = vpop.f32.mrb[1].mxu1 }
  0xdf   :  { %v99_v31 = vpop.f32.mrb[2].mxu1 }
  0xe0   :  { %v100_v32 = vpop.f32.mrb[3].mxu1 }
  0xe5   :  { %v159_v37 = vpop.f32.mrb[4].mxu1 }
  0xe6   :  { %v160_v39 = vadd.f32 %v159_v37, %v95_v29  ;;  %v161_v40 = vpop.f32.mrb[5].mxu1 }
  0xe7   :  { %v162_v41 = vadd.f32 %v161_v40, %v97_v30  ;;  %v163_v42 = vpop.f32.mrb[6].mxu1 }
  0xe8   :  { %v178_v43 = vadd.f32 %v171_v36, %v160_v39  ;;  %v164_v44 = vpop.f32.mrb[7].mxu1 }
  0xe9   :  { %v179_v45 = vadd.f32 %v175_v38, %v162_v41 }
  0xea   :  { %v180_v46 = vmax.f32 %v178_v43, 0.0 }
  0xeb   :  { %v181_v47 = vmax.f32 %v179_v45, 0.0 }
  0xec   :  { %v182_v49 = vpack.c.bf16 %v180_v46, %v180_v46 }
  0xed   :  { %v183_v48 = vpack.c.bf16 %v181_v47, %v181_v47 }
  0xef   :  { %351 = vmatprep.mubr.bf16.mxu0 %v183_v48 }
  0xf0   :  { %352 = vmatmul.mubr.bf16.vlgmr.msra.gmra.mrb[0].mxu0 %v182_v49 }
 0x1c3   :  { %v430_v50 = vpop.f32.mrb[0].mxu0 }
 0x1c4   :  { %v431_v51 = vpop.f32.mrb[1].mxu0 }
 0x1c5   :  { %v432_v53 = vadd.f32 %v431_v51, %v430_v50  ;;  %v433_v54 = vpop.f32.mrb[2].mxu0 }
 0x1c6   :  { %v434_v55 = vpop.f32.mrb[3].mxu0 }
 0x1c7   :  { %v354_v56 = vadd.f32 %v432_v53, %v397_v52 }
 0x1c9   :  { %360 = vrot.lane.b32.xlu0 %v354_v56, %s472_s26 }
 0x23b   :  { %v361_v57 = vpop.permute.xlu0 %360 }
 0x23c   :  { %v363_v58 = vsub.f32 %v354_v56, %v361_v57 }
 0x23e   :  { %v365_v59 = vand.u32 2147483647, %v363_v58  ;;  %v364_v1 = vmax.f32 %v363_v58, 0.0 }
 0x240   :  { %v366_v60 = vsub.f32 0.0, %v365_v59 }
 0x242   :  { %v367_v61 = vmul.f32 1.442695, %v366_v60 }
 0x244   :  { %467 = vpow2.f32 %v367_v61 }
 0x24e   :  { %v468_v62 = vpop.eup %467 }
 0x24f   :  { %v369_v63 = vadd.f32 1.0, %v468_v62 }
 0x251   :  { %469 = vlog2.f32 %v369_v63 }
 0x25b   :  { %v470_v0 = vpop.eup %469 }
 0x25c   :  { %v371_v2 = vmul.f32 0.6931472, %v470_v0 }
 0x25e   :  { %v372_v3 = vadd.f32 %v371_v2, %v364_v1 }
 0x260   :  { %v374_v4 = vsub.f32 %v363_v58, %v372_v3  ;;  %v373_v5 = vsub.f32 0.0, %v372_v3 }
 0x262   :  { %376 = vrot.lane.b32.xlu0 %v373_v5, %s473_s6 }
 0x2d4   :  { %v377_v6 = vpop.permute.xlu0 %376 }
 0x2d5   :  { %v380_v7 = vsel %vm379_vm1, %v377_v6, %v374_v4 }
 0x2d6   :  { %382 = vst.msk [vmem:[%s610_s7] sm:$0xff] %vm381_vm2, %v380_v7 }

</bundles_post_ra>
